<compile_context>
chip_gen: v6e
topology: v6e:2x2x1
jax: 0.10.0
libtpu: 0.0.40
codegen_flags: <defaults>
</compile_context>

<pallas_src>
import jax
import jax.numpy as jnp
from jax import lax
from jax.experimental import pallas as pl
from jax.experimental.pallas import tpu as pltpu


def _round_up(x, m):
    return ((x + m - 1) // m) * m


def _physical_vmem_bytes():
    """Best-effort physical VMEM size; conservative fallback (v7x per-TC 64 MiB)."""
    try:
        info = pltpu.get_tpu_info()
        v = getattr(info, "vmem_capacity_bytes", None)
        if v:
            return int(v)
    except Exception:
        pass
    return 64 << 20


# ----------------------------- kernels -----------------------------

def ffn_kernel_resident(x_ref, w_ref, b_ref, o_ref):
    # x_ref: (tm, D) compute dtype; w_ref: (D, D) compute dtype, already [in, out];
    # b_ref: (1, D) f32; o_ref: (tm, D) output dtype.
    y = jnp.dot(x_ref[...], w_ref[...], preferred_element_type=jnp.float32)
    y = jnp.maximum(y + b_ref[...], 0.0)      # f32 bias add + ReLU
    o_ref[...] = y.astype(o_ref.dtype)        # eval-mode dropout == identity


def ffn_kernel_ktiled(x_ref, w_ref, b_ref, o_ref, acc_ref):
    # Reduction (K) axis is the last grid axis; f32 accumulator lives in VMEM scratch.
    k = pl.program_id(1)

    @pl.when(k == 0)
    def _():
        acc_ref[...] = jnp.zeros_like(acc_ref)

    acc_ref[...] += jnp.dot(x_ref[...], w_ref[...],
                            preferred_element_type=jnp.float32)

    @pl.when(k == pl.num_programs(1) - 1)
    def _():
        y = jnp.maximum(acc_ref[...] + b_ref[...], 0.0)
        o_ref[...] = y.astype(o_ref.dtype)


# ----------------------------- wrapper -----------------------------

def positionwise_feed_forward(x, weight, bias, *, tm=512, tk=None,
                              compute_dtype=None, out_dtype=None,
                              k_tile_threshold_bytes=16 << 20):
    """Eval-mode forward of PositionwiseFeedForward: relu(x @ W^T + b).

    x      : [B, S, d_model]
    weight : [d_model, d_model], PyTorch nn.Linear layout [out, in]
    bias   : [d_model]
    compute_dtype : dtype of x/W on the MXU (pass jnp.bfloat16 for large d_model;
                    accumulation, bias add and ReLU always stay float32).
    out_dtype     : output dtype (defaults to x.dtype; pass bf16 if the next
                    layer accepts it to halve store traffic).
    """
    B, S, D = x.shape
    M = B * S
    cdt = jnp.dtype(compute_dtype) if compute_dtype is not None else jnp.dtype(x.dtype)
    odt = jnp.dtype(out_dtype) if out_dtype is not None else jnp.dtype(x.dtype)
    in_sz = cdt.itemsize
    out_sz = odt.itemsize

    # Wrapper-side prep: no padding, no post-slice.  The reshape is free for a
    # contiguous x; the one-time W transpose to [in, out] (~D^2 bytes) guarantees
    # the native [M,K]@[K,N] MXU path with no per-tile weight transpose.
    x2 = x.reshape(M, D)
    if x2.dtype != cdt:
        x2 = x2.astype(cdt)
    w_t = jnp.transpose(weight)
    if w_t.dtype != cdt:
        w_t = w_t.astype(cdt)
    b2 = bias.astype(jnp.float32).reshape(1, D)

    # Token tile: multiple of 8, or the whole M when M is small; ragged last
    # block (M % tm_eff != 0) is handled by Pallas boundary masking.
    tm = max(8, _round_up(tm, 8))
    tm_eff = M if M <= tm else tm
    grid_m = pl.cdiv(M, tm_eff)

    w_bytes = D * D * in_sz
    use_k_tiling = (w_bytes >= k_tile_threshold_bytes) and (D % 128 == 0)

    vmem_phys = _physical_vmem_bytes()
    cost = pl.CostEstimate(
        flops=2 * M * D * D,
        transcendentals=0,
        bytes_accessed=M * D * in_sz + D * D * in_sz + D * 4 + M * D * out_sz,
    )

    def _compiler_params(vmem_need, dims):
        kw = dict(dimension_semantics=dims)
        # Raise the scoped limit only past the smallest per-chip default (16 MiB
        # on v5e); cap at 3/4 of physical VMEM so Mosaic keeps internal headroom
        # (~48 MiB on v7x, ~96 MiB on v5e/v6e).
        if vmem_need > (16 << 20):
            kw["vmem_limit_bytes"] = min(int(vmem_need * 5 // 4),
                                         int(vmem_phys * 3 // 4))
        return pltpu.CompilerParams(**kw)

    def _invariant_spec(block_shape, index_map, single_buffer):
        # Grid-invariant operands (weight / bias): a second pipeline buffer is
        # pure VMEM waste, so request a single buffer.
        if single_buffer:
            return pl.BlockSpec(block_shape, index_map,
                                pipeline_mode=pl.Buffered(1))
        return pl.BlockSpec(block_shape, index_map)

    def _run(single_buffer):
        if not use_k_tiling:
            # Resident-weight path (small / moderate d_model).
            w_bufs = 1 if single_buffer else 2
            vmem_need = (w_bufs * D * D * in_sz        # weight
                         + 2 * tm_eff * D * in_sz      # x tiles (double buffered)
                         + 2 * tm_eff * D * out_sz     # out tiles
                         + 2 * D * 4                   # bias
                         + (1 << 20))                  # slack
            grid_spec = pltpu.PrefetchScalarGridSpec(
                num_scalar_prefetch=0,
                grid=(grid_m,),
                in_specs=[
                    pl.BlockSpec((tm_eff, D), lambda i: (i, 0)),              # x
                    _invariant_spec((D, D), lambda i: (0, 0), single_buffer),  # W^T
                    _invariant_spec((1, D), lambda i: (0, 0), single_buffer),  # bias
                ],
                out_specs=pl.BlockSpec((tm_eff, D), lambda i: (i, 0)),
            )
            return pl.pallas_call(
                ffn_kernel_resident,
                out_shape=jax.ShapeDtypeStruct((M, D), odt),
                grid_spec=grid_spec,
                compiler_params=_compiler_params(vmem_need, ("parallel",)),
                cost_estimate=cost,
            )(x2, w_t, b2)

        # K-tiled path (large d_model): stream K-slabs of the weight, accumulate
        # in f32 VMEM scratch, bias+ReLU+store on the last K step.
        tk_eff = tk if tk is not None else next(
            t for t in (1024, 512, 256, 128) if D % t == 0)
        assert D % tk_eff == 0 and tk_eff % 128 == 0
        grid_k = D // tk_eff
        vmem_need = (2 * tk_eff * D * in_sz            # weight K-slabs
                     + 2 * tm_eff * tk_eff * in_sz     # x tiles
                     + 2 * tm_eff * D * out_sz         # out tiles
                     + tm_eff * D * 4                  # f32 accumulator
                     + 2 * D * 4                       # bias
                     + (1 << 20))
        grid_spec = pltpu.PrefetchScalarGridSpec(
            num_scalar_prefetch=0,
            grid=(grid_m, grid_k),
            in_specs=[
                pl.BlockSpec((tm_eff, tk_eff), lambda i, k: (i, k)),           # x
                pl.BlockSpec((tk_eff, D), lambda i, k: (k, 0)),                # W^T slab
                _invariant_spec((1, D), lambda i, k: (0, 0), single_buffer),   # bias
            ],
            out_specs=pl.BlockSpec((tm_eff, D), lambda i, k: (i, 0)),
            scratch_shapes=[pltpu.VMEM((tm_eff, D), jnp.float32)],
        )
        return pl.pallas_call(
            ffn_kernel_ktiled,
            out_shape=jax.ShapeDtypeStruct((M, D), odt),
            grid_spec=grid_spec,
            compiler_params=_compiler_params(vmem_need, ("parallel", "arbitrary")),
            cost_estimate=cost,
        )(x2, w_t, b2)

    try:
        out = _run(single_buffer=True)
    except Exception:
        # pipeline_mode=pl.Buffered(1) unsupported in this JAX build -> fall back
        # to default double buffering (numerically identical, just more VMEM).
        out = _run(single_buffer=False)

    return out.reshape(B, S, D)


# ----------------------------- reference -----------------------------

def reference(x, weight, bias):
    y = jnp.einsum("bsd,od->bso", x, weight,
                   preferred_element_type=jnp.float32,
                   precision=lax.Precision.HIGHEST)
    return jnp.maximum(y + bias.astype(jnp.float32), 0.0)


if __name__ == "__main__":
    key = jax.random.PRNGKey(0)
    kx, kw, kb = jax.random.split(key, 3)

    # --- small shape matching the module: batch=2, seq=8, d_model=32 (f32) ---
    B, S, D = 2, 8, 32
    x = jax.random.normal(kx, (B, S, D), dtype=jnp.float32)
    bound = 1.0 / (D ** 0.5)
    weight = jax.random.uniform(kw, (D, D), minval=-bound, maxval=bound,
                                dtype=jnp.float32)
    bias = jax.random.uniform(kb, (D,), minval=-bound, maxval=bound,
                              dtype=jnp.float32)

    out_f32 = jax.block_until_ready(positionwise_feed_forward(x, weight, bias))
    ref_f32 = reference(x, weight, bias)
    assert out_f32.shape == (B, S, D)
    assert jnp.allclose(out_f32, ref_f32, atol=1e-4, rtol=1e-4)

    # --- bf16 MXU path (f32 accumulate / bias / ReLU), f32 output ---
    out_bf16 = jax.block_until_ready(
        positionwise_feed_forward(x, weight, bias, compute_dtype=jnp.bfloat16))
    ref_bf16 = reference(x.astype(jnp.bfloat16), weight.astype(jnp.bfloat16), bias)
    assert out_bf16.shape == (B, S, D)
    assert jnp.allclose(out_bf16, ref_bf16.astype(jnp.float32),
                        atol=2e-2, rtol=2e-2)

    # --- multi-block + ragged token axis (M not a multiple of tm) ---
    B2, S2, D2 = 2, 100, 128
    x2 = jax.random.normal(kx, (B2, S2, D2), dtype=jnp.float32)
    b2b = 1.0 / (D2 ** 0.5)
    w2 = jax.random.uniform(kw, (D2, D2), minval=-b2b, maxval=b2b,
                            dtype=jnp.float32)
    bb2 = jax.random.uniform(kb, (D2,), minval=-b2b, maxval=b2b,
                             dtype=jnp.float32)
    out2 = jax.block_until_ready(positionwise_feed_forward(x2, w2, bb2, tm=64))
    assert jnp.allclose(out2, reference(x2, w2, bb2), atol=1e-4, rtol=1e-4)

    # --- force the K-tiled (reduction-axis accumulator) path on a small shape ---
    B3, S3, D3 = 2, 16, 256
    x3 = jax.random.normal(kx, (B3, S3, D3), dtype=jnp.float32)
    b3b = 1.0 / (D3 ** 0.5)
    w3 = jax.random.uniform(kw, (D3, D3), minval=-b3b, maxval=b3b,
                            dtype=jnp.float32)
    bb3 = jax.random.uniform(kb, (D3,), minval=-b3b, maxval=b3b,
                             dtype=jnp.float32)
    out3 = jax.block_until_ready(
        positionwise_feed_forward(x3, w3, bb3, tm=32, tk=128,
                                  k_tile_threshold_bytes=1))
    assert jnp.allclose(out3, reference(x3, w3, bb3), atol=1e-4, rtol=1e-4)

    print("KERNEL_OK")
</pallas_src>

<mosaic_0001>
module attributes {stable_mosaic.version = 11 : i64} {
  func.func @ffn_kernel_resident(%arg0: i32, %arg1: memref<16x32xf32, #tpu.memory_space<vmem>>, %arg2: memref<32x32xf32, #tpu.memory_space<vmem>>, %arg3: memref<1x32xf32, #tpu.memory_space<vmem>>, %arg4: memref<16x32xf32, #tpu.memory_space<vmem>>) attributes {dimension_semantics = [#tpu.dimension_semantics<parallel>], iteration_bounds = array<i64: 1>, scalar_prefetch = 0 : i64, scratch_operands = 0 : i64, tpu.core_type = #tpu.core_type<tc>, window_params = [{transform_indices = @transform_0, window_bounds = array<i64: 16, 32>}, {pipeline_mode = #tpu.pipeline_mode<synchronous>, transform_indices = @transform_1, window_bounds = array<i64: 32, 32>}, {pipeline_mode = #tpu.pipeline_mode<synchronous>, transform_indices = @transform_2, window_bounds = array<i64: 1, 32>}, {transform_indices = @transform_3, window_bounds = array<i64: 16, 32>}]} {
    %c0 = arith.constant 0 : index
    %c0_0 = arith.constant 0 : index
    %0 = vector.load %arg1[%c0, %c0_0] : memref<16x32xf32, #tpu.memory_space<vmem>>, vector<16x32xf32>
    %c0_1 = arith.constant 0 : index
    %c0_2 = arith.constant 0 : index
    %1 = vector.load %arg2[%c0_1, %c0_2] : memref<32x32xf32, #tpu.memory_space<vmem>>, vector<32x32xf32>
    %cst = arith.constant dense<0.000000e+00> : vector<16x32xf32>
    %2 = tpu.matmul %0, %1, %cst {dimension_numbers = #tpu.dot_dimension_numbers<[1], [0], [0], [1], [0, 0, 1, 1], [], []>} : vector<16x32xf32>, vector<32x32xf32>, vector<16x32xf32> -> vector<16x32xf32>
    %c0_3 = arith.constant 0 : index
    %c0_4 = arith.constant 0 : index
    %3 = vector.load %arg3[%c0_3, %c0_4] : memref<1x32xf32, #tpu.memory_space<vmem>>, vector<1x32xf32>
    %4 = vector.broadcast %3 : vector<1x32xf32> to vector<16x32xf32>
    %5 = arith.addf %2, %4 : vector<16x32xf32>
    %cst_5 = arith.constant 0.000000e+00 : f32
    %6 = vector.broadcast %cst_5 : f32 to vector<16x32xf32>
    %7 = arith.maximumf %5, %6 : vector<16x32xf32>
    %c0_6 = arith.constant 0 : index
    %c0_7 = arith.constant 0 : index
    %8 = vector.load %arg4[%c0_6, %c0_7] : memref<16x32xf32, #tpu.memory_space<vmem>>, vector<16x32xf32>
    tpu.vector_store %arg4[%c0_6, %c0_7], %7 {strides = array<i32>} : memref<16x32xf32, #tpu.memory_space<vmem>>, vector<16x32xf32>,
    return
  }
  func.func @transform_0(%arg0: i32) -> (i32, i32) {
    %c0_i32 = arith.constant 0 : i32
    %c0_i32_0 = arith.constant 0 : i32
    return %arg0, %c0_i32 : i32, i32
  }
  func.func @transform_1(%arg0: i32) -> (i32, i32) {
    %c0_i32 = arith.constant 0 : i32
    %c0_i32_0 = arith.constant 0 : i32
    %c0_i32_1 = arith.constant 0 : i32
    return %c0_i32, %c0_i32_0 : i32, i32
  }
  func.func @transform_2(%arg0: i32) -> (i32, i32) {
    %c0_i32 = arith.constant 0 : i32
    %c0_i32_0 = arith.constant 0 : i32
    %c0_i32_1 = arith.constant 0 : i32
    return %c0_i32, %c0_i32_0 : i32, i32
  }
  func.func @transform_3(%arg0: i32) -> (i32, i32) {
    %c0_i32 = arith.constant 0 : i32
    %c0_i32_0 = arith.constant 0 : i32
    return %arg0, %c0_i32 : i32, i32
  }
}

module attributes {stable_mosaic.version = 11 : i64} {
  func.func @ffn_kernel_resident(%arg0: i32, %arg1: memref<16x32xf32, #tpu.memory_space<vmem>>, %arg2: memref<32x32xf32, #tpu.memory_space<vmem>>, %arg3: memref<1x32xf32, #tpu.memory_space<vmem>>, %arg4: memref<16x32xf32, #tpu.memory_space<vmem>>) attributes {dimension_semantics = [#tpu.dimension_semantics<parallel>], iteration_bounds = array<i64: 1>, scalar_prefetch = 0 : i64, scratch_operands = 0 : i64, tpu.core_type = #tpu.core_type<tc>, window_params = [{transform_indices = @transform_0, window_bounds = array<i64: 16, 32>}, {pipeline_mode = #tpu.pipeline_mode<synchronous>, transform_indices = @transform_1, window_bounds = array<i64: 32, 32>}, {pipeline_mode = #tpu.pipeline_mode<synchronous>, transform_indices = @transform_2, window_bounds = array<i64: 1, 32>}, {transform_indices = @transform_3, window_bounds = array<i64: 16, 32>}]} {
    %c0 = arith.constant 0 : index
    %c0_0 = arith.constant 0 : index
    %0 = vector.load %arg1[%c0, %c0_0] : memref<16x32xf32, #tpu.memory_space<vmem>>, vector<16x32xf32>
    %c0_1 = arith.constant 0 : index
    %c0_2 = arith.constant 0 : index
    %1 = vector.load %arg2[%c0_1, %c0_2] : memref<32x32xf32, #tpu.memory_space<vmem>>, vector<32x32xf32>
    %cst = arith.constant dense<0.000000e+00> : vector<16x32xf32>
    %2 = tpu.matmul %0, %1, %cst {dimension_numbers = #tpu.dot_dimension_numbers<[1], [0], [0], [1], [0, 0, 1, 1], [], []>} : vector<16x32xf32>, vector<32x32xf32>, vector<16x32xf32> -> vector<16x32xf32>
    %c0_3 = arith.constant 0 : index
    %c0_4 = arith.constant 0 : index
    %3 = vector.load %arg3[%c0_3, %c0_4] : memref<1x32xf32, #tpu.memory_space<vmem>>, vector<1x32xf32>
    %4 = vector.broadcast %3 : vector<1x32xf32> to vector<16x32xf32>
    %5 = arith.addf %2, %4 : vector<16x32xf32>
    %cst_5 = arith.constant 0.000000e+00 : f32
    %6 = vector.broadcast %cst_5 : f32 to vector<16x32xf32>
    %7 = arith.maximumf %5, %6 : vector<16x32xf32>
    %c0_6 = arith.constant 0 : index
    %c0_7 = arith.constant 0 : index
    %8 = vector.load %arg4[%c0_6, %c0_7] : memref<16x32xf32, #tpu.memory_space<vmem>>, vector<16x32xf32>
    tpu.vector_store %arg4[%c0_6, %c0_7], %7 {strides = array<i32>} : memref<16x32xf32, #tpu.memory_space<vmem>>, vector<16x32xf32>,
    return
  }
  func.func @transform_0(%arg0: i32) -> (i32, i32) {
    %c0_i32 = arith.constant 0 : i32
    %c0_i32_0 = arith.constant 0 : i32
    return %arg0, %c0_i32 : i32, i32
  }
  func.func @transform_1(%arg0: i32) -> (i32, i32) {
    %c0_i32 = arith.constant 0 : i32
    %c0_i32_0 = arith.constant 0 : i32
    %c0_i32_1 = arith.constant 0 : i32
    return %c0_i32, %c0_i32_0 : i32, i32
  }
  func.func @transform_2(%arg0: i32) -> (i32, i32) {
    %c0_i32 = arith.constant 0 : i32
    %c0_i32_0 = arith.constant 0 : i32
    %c0_i32_1 = arith.constant 0 : i32
    return %c0_i32, %c0_i32_0 : i32, i32
  }
  func.func @transform_3(%arg0: i32) -> (i32, i32) {
    %c0_i32 = arith.constant 0 : i32
    %c0_i32_0 = arith.constant 0 : i32
    return %arg0, %c0_i32 : i32, i32
  }
}

</mosaic_0001>

<bundles_post_ra>
// kernel: tpu_custom_call.1
= control target key start
LH: loop header
LB: loop body
LE: loop exit
PB: predicated region body
PF: predicated region fallthrough
CT: control target
= control target key end

     0   :  { %8 = vsyncpa [#allocation3], 0  ;;  %s301_s0 = inlined_call_operand.hbm [shape: f32[16,32], index: 0, kind: input, shape index: {}]   ;;  %s302_s1 = inlined_call_operand.hbm [shape: f32[32,32], index: 1, kind: input, shape index: {}]   ;;  %s303_s2 = inlined_call_operand.vmem [shape: f32[1,32], index: 2, kind: input, shape index: {}]   ;;  %s304_s3 = inlined_call_operand.hbm [shape: f32[16,32], index: 3, kind: output, shape index: {}]  }
   0x1   :  { %9 = vsyncpa [#allocation6], 0 }
   0x2   :  { %10 = vsyncpa [#allocation4], 0  ;;  %s251_s12 = smov [#allocation2]  }
   0x3   :  { %s16_s13 = sshll.u32 %s251_s12, 4  ;;  %s17_s13 = int_to_ptr.vmem [resolvable:$true] %s16_s13 }
   0x4   :  { %s193_s14 = scalar_lea.vmem %s17_s13, 256  ;;  %p198_p1 = scmp.lt.s32.totalorder %s17_s13, %s17_s13 }
   0x5   :  { %p194_p0 = scmp.ne.s32.totalorder %s17_s13, %s193_s14  ;;  %p199_p2 = scmp.lt.s32.totalorder %s193_s14, %s193_s14 }
   0x7   :  { %p200_p3 = por %p199_p2, %p198_p1 }
   0x9   :  { %p201_p4 = pnand %p200_p3, %p194_p0 }
   0xb   :  { %204 = shalt.err (!%p201_p4)
}
   0xc   :  { %s252_s15 = smov 128   ;;  %s253_s16 = smov 8  }
   0xd   :  { %22 = dma.hbm_to_vmem [thread:$0]  %s301_s0, 256, %s17_s13, [#allocation3], %s252_s15, %s252_s15, %s253_s16  }
   0xe   :  { %s254_s19 = smov [#allocation5]  }
   0xf   :  { %s28_s20 = sshll.u32 %s254_s19, 4  ;;  %s29_s20 = int_to_ptr.vmem [resolvable:$true] %s28_s20 }
  0x10   :  { %s213_s21 = scalar_lea.vmem %s29_s20, 512  ;;  %p218_p6 = scmp.lt.s32.totalorder %s29_s20, %s29_s20 }
  0x11   :  { %p214_p5 = scmp.ne.s32.totalorder %s29_s20, %s213_s21  ;;  %p219_p7 = scmp.lt.s32.totalorder %s213_s21, %s213_s21 }
  0x13   :  { %p220_p8 = por %p219_p7, %p218_p6 }
  0x15   :  { %p221_p9 = pnand %p220_p8, %p214_p5 }
  0x17   :  { %224 = shalt.err (!%p221_p9)
}
  0x18   :  { %34 = dma.hbm_to_vmem [thread:$0]  %s302_s1, 512, %s29_s20, [#allocation6], %s252_s15, %s252_s15, %s253_s16  }
  0x19   :  { %245 = dma.done.wait [#allocation3], 256  }
  0x1a   :  { %246 = vsyncadd [#allocation3], 4294967040 }
  0x1b   :  { %247 = dma.done.wait [#allocation6], 512  }
  0x1c   :  { %248 = vsyncadd [#allocation6], 4294966784  ;;  %vm56_vm0 = vcmask 261120   ;;  %v48_v0 = vld [vmem:[#allocation5 + $0x18] sm:$0xff]  ;;  %v47_v1 = vld [vmem:[#allocation5 + $0x10] sm:$0xff]  ;;  %s255_s24 = smov [#allocation7]  }
  0x1d   :  { %169 = vmatprep.subr.mxu0 %v48_v0  ;;  %v43_v2 = vld [vmem:[#allocation2] sm:$0xff]  ;;  %v46_v3 = vld [vmem:[#allocation5 + $0x8] sm:$0xff]  ;;  %v45_v4 = vld [vmem:[#allocation5] sm:$0xff]  ;;  %s147_s25 = sshll.u32 %s255_s24, 4  ;;  %s148_s25 = int_to_ptr.vmem [resolvable:$true] %s147_s25 }
  0x1e   :  { %170 = vmatpush3.msra.mxu0 %v48_v0  ;;  %177 = vmatprep.mubr.msk.f32.mxu0 %vm56_vm0, %v43_v2  ;;  %v44_v5 = vld [vmem:[#allocation2 + $0x8] sm:$0xff]  ;;  %v160_v6 = vld [vmem:[%s303_s2] ss:$0 sm:$0xff]  ;;  %s225_s26 = scalar_lea.vmem %s148_s25, 256  ;;  %p230_p11 = scmp.lt.s32.totalorder %s148_s25, %s148_s25 }
  0x1f   :  { %171 = vmatprep.subr.mxu0 %v47_v1  ;;  %p226_p10 = scmp.ne.s32.totalorder %s148_s25, %s225_s26  ;;  %p231_p12 = scmp.lt.s32.totalorder %s225_s26, %s225_s26 }
  0x20   :  { %172 = vmatpush3.msra.mxu0 %v47_v1 }
  0x21   :  { %173 = vmatprep.subr.mxu0 %v46_v3  ;;  %p232_p13 = por %p231_p12, %p230_p11 }
  0x22   :  { %174 = vmatpush3.msra.mxu0 %v46_v3 }
  0x23   :  { %175 = vmatprep.subr.mxu0 %v45_v4  ;;  %p233_p0 = pnand %p232_p13, %p226_p10 }
  0x24   :  { %176 = vmatpush3.msra.mxu0 %v45_v4 }
  0x25   :  { %178 = vmatmul.mubr.msk.f32.vlgmr.msra.gmra.mxu0 %vm56_vm0, %v44_v5 }
  0xe5   :  { %v179_v7 = vpop.f32.mrf.mxu0 }
  0xe6   :  { %v135_v8 = vadd.f32 %v179_v7, %v160_v6 }
  0xe7   :  { %v129_v9 = vpop.f32.mrf.mxu0 }
  0xe8   :  { %v139_v10 = vmax.f32 %v135_v8, 0.0  ;;  %v130_v11 = vadd.f32 %v160_v6, %v129_v9 }
  0xea   :  { %141 = vst.msk [vmem:[#allocation7 + $0x8] sm:$0xff] %vm56_vm0, %v139_v10  ;;  %v138_v12 = vmax.f32 %v130_v11, 0.0 }
  0xec   :  { %140 = vst.msk [vmem:[#allocation7] sm:$0xff] %vm56_vm0, %v138_v12 }
  0xed   :  { %236 = shalt.err (!%p233_p0)
}
  0xee   :  { %153 = dma.vmem_to_hbm [thread:$0]  %s148_s25, 256, %s304_s3, [#allocation4], %s252_s15, %s252_s15, %s253_s16  }
  0xef   :  { %249 = dma.done.wait [#allocation4], 256  }
  0xf0   :  { %250 = vsyncadd [#allocation4], 4294967040 }
  0xf1   :  { %157 = vsyncpa [#allocation3], 1 }
  0xf2   :  { %158 = vsyncpa [#allocation6], 1 }
  0xf3   :  { %159 = vsyncpa [#allocation4], 1 }

// kernel: tpu_custom_call.1
= control target key start
LH: loop header
LB: loop body
LE: loop exit
PB: predicated region body
PF: predicated region fallthrough
CT: control target
= control target key end

     0   :  { %8 = vsyncpa [#allocation3], 0  ;;  %s301_s0 = inlined_call_operand.hbm [shape: f32[16,32], index: 0, kind: input, shape index: {}]   ;;  %s302_s1 = inlined_call_operand.hbm [shape: f32[32,32], index: 1, kind: input, shape index: {}]   ;;  %s303_s2 = inlined_call_operand.vmem [shape: f32[1,32], index: 2, kind: input, shape index: {}]   ;;  %s304_s3 = inlined_call_operand.hbm [shape: f32[16,32], index: 3, kind: output, shape index: {}]  }
   0x1   :  { %9 = vsyncpa [#allocation6], 0 }
   0x2   :  { %10 = vsyncpa [#allocation4], 0  ;;  %s251_s12 = smov [#allocation2]  }
   0x3   :  { %s16_s13 = sshll.u32 %s251_s12, 4  ;;  %s17_s13 = int_to_ptr.vmem [resolvable:$true] %s16_s13 }
   0x4   :  { %s193_s14 = scalar_lea.vmem %s17_s13, 256  ;;  %p198_p1 = scmp.lt.s32.totalorder %s17_s13, %s17_s13 }
   0x5   :  { %p194_p0 = scmp.ne.s32.totalorder %s17_s13, %s193_s14  ;;  %p199_p2 = scmp.lt.s32.totalorder %s193_s14, %s193_s14 }
   0x7   :  { %p200_p3 = por %p199_p2, %p198_p1 }
   0x9   :  { %p201_p4 = pnand %p200_p3, %p194_p0 }
   0xb   :  { %204 = shalt.err (!%p201_p4)
}
   0xc   :  { %s252_s15 = smov 128   ;;  %s253_s16 = smov 8  }
   0xd   :  { %22 = dma.hbm_to_vmem [thread:$0]  %s301_s0, 256, %s17_s13, [#allocation3], %s252_s15, %s252_s15, %s253_s16  }
   0xe   :  { %s254_s19 = smov [#allocation5]  }
   0xf   :  { %s28_s20 = sshll.u32 %s254_s19, 4  ;;  %s29_s20 = int_to_ptr.vmem [resolvable:$true] %s28_s20 }
  0x10   :  { %s213_s21 = scalar_lea.vmem %s29_s20, 512  ;;  %p218_p6 = scmp.lt.s32.totalorder %s29_s20, %s29_s20 }
  0x11   :  { %p214_p5 = scmp.ne.s32.totalorder %s29_s20, %s213_s21  ;;  %p219_p7 = scmp.lt.s32.totalorder %s213_s21, %s213_s21 }
  0x13   :  { %p220_p8 = por %p219_p7, %p218_p6 }
  0x15   :  { %p221_p9 = pnand %p220_p8, %p214_p5 }
  0x17   :  { %224 = shalt.err (!%p221_p9)
}
  0x18   :  { %34 = dma.hbm_to_vmem [thread:$0]  %s302_s1, 512, %s29_s20, [#allocation6], %s252_s15, %s252_s15, %s253_s16  }
  0x19   :  { %245 = dma.done.wait [#allocation3], 256  }
  0x1a   :  { %246 = vsyncadd [#allocation3], 4294967040 }
  0x1b   :  { %247 = dma.done.wait [#allocation6], 512  }
  0x1c   :  { %248 = vsyncadd [#allocation6], 4294966784  ;;  %vm56_vm0 = vcmask 261120   ;;  %v48_v0 = vld [vmem:[#allocation5 + $0x18] sm:$0xff]  ;;  %v47_v1 = vld [vmem:[#allocation5 + $0x10] sm:$0xff]  ;;  %s255_s24 = smov [#allocation7]  }
  0x1d   :  { %169 = vmatprep.subr.mxu0 %v48_v0  ;;  %v43_v2 = vld [vmem:[#allocation2] sm:$0xff]  ;;  %v46_v3 = vld [vmem:[#allocation5 + $0x8] sm:$0xff]  ;;  %v45_v4 = vld [vmem:[#allocation5] sm:$0xff]  ;;  %s147_s25 = sshll.u32 %s255_s24, 4  ;;  %s148_s25 = int_to_ptr.vmem [resolvable:$true] %s147_s25 }
  0x1e   :  { %170 = vmatpush3.msra.mxu0 %v48_v0  ;;  %177 = vmatprep.mubr.msk.f32.mxu0 %vm56_vm0, %v43_v2  ;;  %v44_v5 = vld [vmem:[#allocation2 + $0x8] sm:$0xff]  ;;  %v160_v6 = vld [vmem:[%s303_s2] ss:$0 sm:$0xff]  ;;  %s225_s26 = scalar_lea.vmem %s148_s25, 256  ;;  %p230_p11 = scmp.lt.s32.totalorder %s148_s25, %s148_s25 }
  0x1f   :  { %171 = vmatprep.subr.mxu0 %v47_v1  ;;  %p226_p10 = scmp.ne.s32.totalorder %s148_s25, %s225_s26  ;;  %p231_p12 = scmp.lt.s32.totalorder %s225_s26, %s225_s26 }
  0x20   :  { %172 = vmatpush3.msra.mxu0 %v47_v1 }
  0x21   :  { %173 = vmatprep.subr.mxu0 %v46_v3  ;;  %p232_p13 = por %p231_p12, %p230_p11 }
  0x22   :  { %174 = vmatpush3.msra.mxu0 %v46_v3 }
  0x23   :  { %175 = vmatprep.subr.mxu0 %v45_v4  ;;  %p233_p0 = pnand %p232_p13, %p226_p10 }
  0x24   :  { %176 = vmatpush3.msra.mxu0 %v45_v4 }
  0x25   :  { %178 = vmatmul.mubr.msk.f32.vlgmr.msra.gmra.mxu0 %vm56_vm0, %v44_v5 }
  0xe5   :  { %v179_v7 = vpop.f32.mrf.mxu0 }
  0xe6   :  { %v135_v8 = vadd.f32 %v179_v7, %v160_v6 }
  0xe7   :  { %v129_v9 = vpop.f32.mrf.mxu0 }
  0xe8   :  { %v139_v10 = vmax.f32 %v135_v8, 0.0  ;;  %v130_v11 = vadd.f32 %v160_v6, %v129_v9 }
  0xea   :  { %141 = vst.msk [vmem:[#allocation7 + $0x8] sm:$0xff] %vm56_vm0, %v139_v10  ;;  %v138_v12 = vmax.f32 %v130_v11, 0.0 }
  0xec   :  { %140 = vst.msk [vmem:[#allocation7] sm:$0xff] %vm56_vm0, %v138_v12 }
  0xed   :  { %236 = shalt.err (!%p233_p0)
}
  0xee   :  { %153 = dma.vmem_to_hbm [thread:$0]  %s148_s25, 256, %s304_s3, [#allocation4], %s252_s15, %s252_s15, %s253_s16  }
  0xef   :  { %249 = dma.done.wait [#allocation4], 256  }
  0xf0   :  { %250 = vsyncadd [#allocation4], 4294967040 }
  0xf1   :  { %157 = vsyncpa [#allocation3], 1 }
  0xf2   :  { %158 = vsyncpa [#allocation6], 1 }
  0xf3   :  { %159 = vsyncpa [#allocation4], 1 }

</bundles_post_ra>
